<compile_context>
chip_gen: v5e
topology: v5e:2x2
jax: 0.10.0
libtpu: 0.0.40
codegen_flags: <defaults>
</compile_context>

<pallas_src>
import jax
import jax.numpy as jnp
from jax import lax
from jax.experimental import pallas as pl
from jax.experimental.pallas import tpu as pltpu

IGNORE_INDEX = 255


def _vmem_budget():
    """Returns (bytes usable for blocks+temporaries, scoped-VMEM limit to request)."""
    cap = 64 * 1024 * 1024                       # conservative fallback (v7x per-TC VMEM)
    try:
        cap = int(pltpu.get_tpu_info().vmem_capacity_bytes)
    except Exception:
        pass
    return int(cap * 0.60), int(cap * 0.75)


def _pick_tile_pix(total_pix, num_classes, logit_itemsize, tgt_itemsize, batch,
                   vmem_budget_bytes, max_tile=65536, min_parallel_steps=4):
    """Pixels per grid step: lane-aligned (x128), derived from the VMEM budget,
    while keeping enough grid steps for multi-TensorCore parts (v7x)."""
    # Per-pixel VMEM footprint of one grid step:
    #   double-buffered logits block + ~3 f32 (C, T) elementwise temporaries
    #   (x - m, exp, fusion slack) + double-buffered targets block.
    bytes_per_pixel = (2 * num_classes * logit_itemsize
                       + 3 * num_classes * 4
                       + 2 * tgt_itemsize)
    cap = max(128, (vmem_budget_bytes // bytes_per_pixel) // 128 * 128)
    tile = min(max_tile, cap)

    # Guarantee >= min_parallel_steps total "parallel" grid steps when batch is small
    # so both v7x TensorCores get work; no effect once batch >= min_parallel_steps.
    want_tiles = -(-min_parallel_steps // max(1, batch))
    if want_tiles > 1 and total_pix > 128:
        per = -(-total_pix // want_tiles)
        per = max(128, ((per + 127) // 128) * 128)
        tile = min(tile, per)

    if tile >= total_pix:
        return total_pix              # single pixel tile: block spans the full extent
    return max(128, (tile // 128) * 128)


def _make_ce2d_kernel(tile_pix, total_pix, ignore_index):
    def kernel(logits_ref, targets_ref, out_ref):
        j = pl.program_id(1)                                  # pixel-tile index

        x = logits_ref[0]                                     # (C, T), native dtype
        t = targets_ref[0].astype(jnp.int32)                  # (1, T), widened in-register

        # max and the one-hot gather are exact in the native dtype -> no full-tile
        # f32 promotion needed for them (halves VALU traffic for bf16 on v6e/v7x).
        m = jnp.max(x, axis=0, keepdims=True)                 # (1, T)
        cls = lax.broadcasted_iota(jnp.int32, x.shape, 0)     # (C, T)
        picked = jnp.sum(jnp.where(cls == t, x, 0.0), axis=0,
                         keepdims=True).astype(jnp.float32)   # (1, T) = x[target], exact

        # Only the shifted exp path runs in f32: a single full-tile f32 temporary.
        m32 = m.astype(jnp.float32)
        xm = x.astype(jnp.float32) - m32                      # (C, T) f32
        se = jnp.sum(jnp.exp(xm), axis=0, keepdims=True)      # (1, T) f32
        lse = m32 + jnp.log(se)

        # mask ignore_index pixels and the ragged tail of the last pixel tile
        pix = j * tile_pix + lax.broadcasted_iota(jnp.int32, t.shape, 1)
        valid = (t != ignore_index) & (pix < total_pix)

        loss = jnp.where(valid, lse - picked, 0.0)            # (1, T) = -log p[target]
        tile_sum = jnp.sum(loss)
        tile_cnt = jnp.sum(valid.astype(jnp.float32))

        # per-tile partial (sum, count) packed into lanes 0 / 1 of a 128-wide block
        lane = lax.broadcasted_iota(jnp.int32, (1, 1, 1, 128), 3)
        out_ref[...] = jnp.where(lane == 0, tile_sum,
                                 jnp.where(lane == 1, tile_cnt, 0.0))

    return kernel


def cross_entropy_loss_2d(inputs, targets, *, tile_pix=None,
                          ignore_index=IGNORE_INDEX):
    """inputs: (N, C, H, W) float logits; targets: (N, 1, H, W) integer class ids.
    Returns mean over pixels with target != ignore_index of -log_softmax(inputs)[target]
    (PyTorch NLLLoss(weight=None, size_average=True, ignore_index=255))."""
    N, C, H, W = inputs.shape
    P = H * W

    logits = inputs.reshape(N, C, P)               # free: contiguous collapse of H, W

    # Stream targets at their native narrow dtype (uint8/int16/int32) and widen
    # in-kernel; only force a cast for dtypes the TPU can't load directly.
    tdt = targets.dtype
    if (not jnp.issubdtype(tdt, jnp.integer)) or tdt.itemsize > 4:
        targets = targets.astype(jnp.int32)
    tgt = targets.reshape(N, 1, P)

    budget, vmem_limit = _vmem_budget()
    if tile_pix is None:
        tile_pix = _pick_tile_pix(P, C, inputs.dtype.itemsize, tgt.dtype.itemsize,
                                  N, budget)
    tile_pix = min(tile_pix, P)
    if tile_pix < P:                               # enforce lane-aligned partial tiles
        tile_pix = max(128, (tile_pix // 128) * 128)
    num_tiles = pl.cdiv(P, tile_pix)

    kernel = _make_ce2d_kernel(tile_pix, P, ignore_index)

    bytes_accessed = (logits.size * logits.dtype.itemsize
                      + tgt.size * tgt.dtype.itemsize
                      + N * num_tiles * 128 * 4)
    cost = pl.CostEstimate(flops=int(5 * N * C * P),
                           transcendentals=int(N * P * (C + 1)),
                           bytes_accessed=int(bytes_accessed))

    partials = pl.pallas_call(
        kernel,
        out_shape=jax.ShapeDtypeStruct((N, num_tiles, 1, 128), jnp.float32),
        grid_spec=pltpu.PrefetchScalarGridSpec(
            num_scalar_prefetch=0,
            grid=(N, num_tiles),
            in_specs=[
                pl.BlockSpec((1, C, tile_pix), lambda n, j: (n, 0, j)),
                pl.BlockSpec((1, 1, tile_pix), lambda n, j: (n, 0, j)),
            ],
            out_specs=pl.BlockSpec((1, 1, 1, 128), lambda n, j: (n, j, 0, 0)),
        ),
        compiler_params=pltpu.CompilerParams(
            dimension_semantics=("parallel", "parallel"),
            vmem_limit_bytes=int(vmem_limit)),
        cost_estimate=cost,
    )(logits, tgt)

    total = jnp.sum(partials[..., 0])
    count = jnp.sum(partials[..., 1])
    # NOTE: if every pixel is ignore_index this is 0/0 -> NaN, matching torch's
    # mean-reduction convention for an empty valid set.
    return total / count


def _reference_loss(inputs, targets, ignore_index=IGNORE_INDEX):
    logp = jax.nn.log_softmax(inputs.astype(jnp.float32), axis=1)
    t = jnp.squeeze(targets, axis=1).astype(jnp.int32)
    valid = t != ignore_index
    t_safe = jnp.where(valid, t, 0)
    picked = jnp.take_along_axis(logp, t_safe[:, None, :, :], axis=1)[:, 0]
    losses = jnp.where(valid, -picked, 0.0)
    return jnp.sum(losses) / jnp.sum(valid.astype(jnp.float32))


if __name__ == "__main__":
    key = jax.random.PRNGKey(0)
    keys = jax.random.split(key, 9)

    # Case 1: f32 logits, int32 targets, default (budget + parallel-aware) tiling.
    N, C, H, W = 2, 4, 16, 16
    x = jax.random.normal(keys[0], (N, C, H, W), dtype=jnp.float32)
    t = jax.random.randint(keys[1], (N, 1, H, W), 0, C, dtype=jnp.int32)
    t = jnp.where(jax.random.bernoulli(keys[2], 0.1, (N, 1, H, W)), IGNORE_INDEX, t)

    loss = cross_entropy_loss_2d(x, t)
    jax.block_until_ready(loss)
    ref = _reference_loss(x, t)
    assert jnp.allclose(loss, ref, rtol=1e-5, atol=1e-5), (loss, ref)

    # Case 2: bf16 logits + uint8 targets streamed at native width, forced small tile
    # so H*W is not a tile multiple (ragged-tail mask + multi-tile "parallel" grid).
    N2, C2, H2, W2 = 2, 5, 18, 18      # P = 324 -> tiles of 128, ragged tail of 68
    x2 = jax.random.normal(keys[3], (N2, C2, H2, W2), dtype=jnp.bfloat16)
    t2 = jax.random.randint(keys[4], (N2, 1, H2, W2), 0, C2, dtype=jnp.int32)
    t2 = jnp.where(jax.random.bernoulli(keys[5], 0.1, (N2, 1, H2, W2)), IGNORE_INDEX, t2)
    t2 = t2.astype(jnp.uint8)

    loss2 = cross_entropy_loss_2d(x2, t2, tile_pix=128)
    jax.block_until_ready(loss2)
    ref2 = _reference_loss(x2, t2)
    assert jnp.allclose(loss2, ref2, rtol=1e-4, atol=1e-4), (loss2, ref2)

    # Case 3: small spatial extent -> single full-extent (non-128-multiple) pixel block.
    N3, C3, H3, W3 = 4, 3, 8, 8
    x3 = jax.random.normal(keys[6], (N3, C3, H3, W3), dtype=jnp.float32)
    t3 = jax.random.randint(keys[7], (N3, 1, H3, W3), 0, C3, dtype=jnp.int32)
    t3 = jnp.where(jax.random.bernoulli(keys[8], 0.1, (N3, 1, H3, W3)), IGNORE_INDEX, t3)

    loss3 = cross_entropy_loss_2d(x3, t3)
    jax.block_until_ready(loss3)
    ref3 = _reference_loss(x3, t3)
    assert jnp.allclose(loss3, ref3, rtol=1e-5, atol=1e-5), (loss3, ref3)

    print("KERNEL_OK")
</pallas_src>

<mosaic_0001>
module attributes {stable_mosaic.version = 11 : i64} {
  func.func @kernel(%arg0: i32, %arg1: i32, %arg2: memref<1x4x128xf32, #tpu.memory_space<vmem>>, %arg3: memref<1x1x128xi32, #tpu.memory_space<vmem>>, %arg4: memref<1x1x1x128xf32, #tpu.memory_space<vmem>>) attributes {dimension_semantics = [#tpu.dimension_semantics<parallel>, #tpu.dimension_semantics<parallel>], iteration_bounds = array<i64: 2, 2>, scalar_prefetch = 0 : i64, scratch_operands = 0 : i64, tpu.core_type = #tpu.core_type<tc>, window_params = [{transform_indices = @transform_0, window_bounds = array<i64: 1, 4, 128>}, {transform_indices = @transform_1, window_bounds = array<i64: 1, 1, 128>}, {transform_indices = @transform_2, window_bounds = array<i64: 1, 1, 1, 128>}]} {
    %c0 = arith.constant 0 : index
    %c0_0 = arith.constant 0 : index
    %c0_1 = arith.constant 0 : index
    %0 = vector.load %arg2[%c0, %c0_0, %c0_1] : memref<1x4x128xf32, #tpu.memory_space<vmem>>, vector<1x4x128xf32>
    %1 = vector.shape_cast %0 : vector<1x4x128xf32> to vector<4x128xf32>
    %c0_2 = arith.constant 0 : index
    %c0_3 = arith.constant 0 : index
    %c0_4 = arith.constant 0 : index
    %2 = vector.load %arg3[%c0_2, %c0_3, %c0_4] : memref<1x1x128xi32, #tpu.memory_space<vmem>>, vector<1x1x128xi32>
    %3 = vector.shape_cast %2 : vector<1x1x128xi32> to vector<1x128xi32>
    %cst = arith.constant dense<0xFF800000> : vector<128xf32>
    %4 = vector.multi_reduction <maximumf>, %1, %cst [0] : vector<4x128xf32> to vector<128xf32>
    %5 = vector.shape_cast %4 : vector<128xf32> to vector<1x128xf32>
    %6 = tpu.iota {dimensions = array<i32: 0>} : vector<4x128xi32>
    %7 = vector.broadcast %3 : vector<1x128xi32> to vector<4x128xi32>
    %8 = arith.cmpi eq, %6, %7 : vector<4x128xi32>
    %cst_5 = arith.constant 0.000000e+00 : f32
    %9 = vector.broadcast %cst_5 : f32 to vector<4x128xf32>
    %10 = arith.select %8, %1, %9 : vector<4x128xi1>, vector<4x128xf32>
    %cst_6 = arith.constant dense<0.000000e+00> : vector<128xf32>
    %11 = vector.multi_reduction <add>, %10, %cst_6 [0] : vector<4x128xf32> to vector<128xf32>
    %12 = vector.shape_cast %11 : vector<128xf32> to vector<1x128xf32>
    %13 = vector.broadcast %5 : vector<1x128xf32> to vector<4x128xf32>
    %14 = arith.subf %1, %13 : vector<4x128xf32>
    %15 = math.exp %14 : vector<4x128xf32>
    %cst_7 = arith.constant dense<0.000000e+00> : vector<128xf32>
    %16 = vector.multi_reduction <add>, %15, %cst_7 [0] : vector<4x128xf32> to vector<128xf32>
    %17 = vector.shape_cast %16 : vector<128xf32> to vector<1x128xf32>
    %18 = math.log %17 : vector<1x128xf32>
    %19 = arith.addf %5, %18 : vector<1x128xf32>
    %c128_i32 = arith.constant 128 : i32
    %20 = arith.muli %arg1, %c128_i32 : i32
    %21 = tpu.iota {dimensions = array<i32: 1>} : vector<1x128xi32>
    %22 = vector.broadcast %20 : i32 to vector<1x128xi32>
    %23 = arith.addi %22, %21 : vector<1x128xi32>
    %c255_i32 = arith.constant 255 : i32
    %24 = vector.broadcast %c255_i32 : i32 to vector<1x128xi32>
    %25 = arith.cmpi ne, %3, %24 : vector<1x128xi32>
    %c256_i32 = arith.constant 256 : i32
    %26 = vector.broadcast %c256_i32 : i32 to vector<1x128xi32>
    %27 = arith.cmpi slt, %23, %26 : vector<1x128xi32>
    %28 = arith.andi %25, %27 : vector<1x128xi1>
    %29 = arith.subf %19, %12 : vector<1x128xf32>
    %cst_8 = arith.constant 0.000000e+00 : f32
    %30 = vector.broadcast %cst_8 : f32 to vector<1x128xf32>
    %31 = arith.select %28, %29, %30 : vector<1x128xi1>, vector<1x128xf32>
    %32 = vector.shape_cast %31 : vector<1x128xf32> to vector<1x1x128xf32>
    %cst_9 = arith.constant dense<0.000000e+00> : vector<1xf32>
    %33 = vector.multi_reduction <add>, %32, %cst_9 [1, 2] : vector<1x1x128xf32> to vector<1xf32>
    %34 = vector.shape_cast %33 : vector<1xf32> to vector<1x1x1xf32>
    %35 = vector.extract %34[0, 0, 0] : f32 from vector<1x1x1xf32>
    %36 = arith.extui %28 : vector<1x128xi1> to vector<1x128xi32>
    %37 = arith.sitofp %36 : vector<1x128xi32> to vector<1x128xf32>
    %38 = vector.shape_cast %37 : vector<1x128xf32> to vector<1x1x128xf32>
    %cst_10 = arith.constant dense<0.000000e+00> : vector<1xf32>
    %39 = vector.multi_reduction <add>, %38, %cst_10 [1, 2] : vector<1x1x128xf32> to vector<1xf32>
    %40 = vector.shape_cast %39 : vector<1xf32> to vector<1x1x1xf32>
    %41 = vector.extract %40[0, 0, 0] : f32 from vector<1x1x1xf32>
    %42 = tpu.iota {dimensions = array<i32: 3>} : vector<1x1x1x128xi32>
    %c0_i32 = arith.constant 0 : i32
    %43 = vector.broadcast %c0_i32 : i32 to vector<1x1x1x128xi32>
    %44 = arith.cmpi eq, %42, %43 : vector<1x1x1x128xi32>
    %c1_i32 = arith.constant 1 : i32
    %45 = vector.broadcast %c1_i32 : i32 to vector<1x1x1x128xi32>
    %46 = arith.cmpi eq, %42, %45 : vector<1x1x1x128xi32>
    %cst_11 = arith.constant 0.000000e+00 : f32
    %47 = vector.broadcast %41 : f32 to vector<1x1x1x128xf32>
    %48 = vector.broadcast %cst_11 : f32 to vector<1x1x1x128xf32>
    %49 = arith.select %46, %47, %48 : vector<1x1x1x128xi1>, vector<1x1x1x128xf32>
    %50 = vector.broadcast %35 : f32 to vector<1x1x1x128xf32>
    %51 = arith.select %44, %50, %49 : vector<1x1x1x128xi1>, vector<1x1x1x128xf32>
    %c0_12 = arith.constant 0 : index
    %c0_13 = arith.constant 0 : index
    %c0_14 = arith.constant 0 : index
    %c0_15 = arith.constant 0 : index
    %52 = vector.load %arg4[%c0_12, %c0_13, %c0_14, %c0_15] : memref<1x1x1x128xf32, #tpu.memory_space<vmem>>, vector<1x1x1x128xf32>
    tpu.vector_store %arg4[%c0_12, %c0_13, %c0_14, %c0_15], %51 {strides = array<i32>} : memref<1x1x1x128xf32, #tpu.memory_space<vmem>>, vector<1x1x1x128xf32>,
    return
  }
  func.func @transform_0(%arg0: i32, %arg1: i32) -> (i32, i32, i32) {
    %c0_i32 = arith.constant 0 : i32
    %c0_i32_0 = arith.constant 0 : i32
    return %arg0, %c0_i32, %arg1 : i32, i32, i32
  }
  func.func @transform_1(%arg0: i32, %arg1: i32) -> (i32, i32, i32) {
    %c0_i32 = arith.constant 0 : i32
    %c0_i32_0 = arith.constant 0 : i32
    return %arg0, %c0_i32, %arg1 : i32, i32, i32
  }
  func.func @transform_2(%arg0: i32, %arg1: i32) -> (i32, i32, i32, i32) {
    %c0_i32 = arith.constant 0 : i32
    %c0_i32_0 = arith.constant 0 : i32
    %c0_i32_1 = arith.constant 0 : i32
    return %arg0, %arg1, %c0_i32, %c0_i32_0 : i32, i32, i32, i32
  }
}

</mosaic_0001>

<bundles_post_ra>
// kernel: tpu_custom_call.1
= control target key start
LH: loop header
LB: loop body
LE: loop exit
PB: predicated region body
PF: predicated region fallthrough
CT: control target
= control target key end

     0   :  { %7 = vsyncpa [#allocation3], 0  ;;  %s865_s0 = inlined_call_operand.hbm [shape: f32[2,4,256], index: 0, kind: input, shape index: {}]   ;;  %s866_s1 = inlined_call_operand.hbm [shape: s32[2,1,256], index: 1, kind: input, shape index: {}]   ;;  %s867_s2 = inlined_call_operand.hbm [shape: f32[2,2,1,128], index: 2, kind: output, shape index: {}]  }
   0x1   :  { %9 = vsyncpa [#allocation3 + $0x1], 0 }
   0x2   :  { %10 = vsyncpa [#allocation6], 0 }
   0x3   :  { %12 = vsyncpa [#allocation6 + $0x1], 0 }
   0x4   :  { %13 = vsyncpa [#allocation4], 0 }
   0x5   :  { %15 = vsyncpa [#allocation4 + $0x1], 0  ;;  %s697_s9 = smov 0   ;;  %s699_s10 = smov 0  }
   0x6   :  { %s701_s11 = smov 0   ;;  %s703_s12 = smov 0  }
   0x7   :  { %s705_s13 = smov 0   ;;  %s707_s14 = smov 0  }
   0x8   :  { %s709_s15 = smov 0   ;;  %s711_s16 = smov 0  }
   0x9 LB: > { %s409_s17 = sadd.s32 4294967295, %s679_s16   ;;  %s410_s18 = sadd.s32 4294967294, %s679_s16   ;;  %s679_s16 = sphi %s711_s16, %s21_s16   ;;  %s675_s15 = sphi %s709_s15, %s879_s15   ;;  %s671_s14 = sphi %s707_s14, %s878_s14   ;;  %s667_s13 = sphi %s705_s13, %s877_s13   ;;  %s663_s12 = sphi %s703_s12, %s876_s12   ;;  %s659_s11 = sphi %s701_s11, %s875_s11   ;;  %s655_s10 = sphi %s699_s10, %s874_s10   ;;  %s651_s9 = sphi %s697_s9, %s873_s9  }
   0xa   : > { %s30_s19 = sadd.s32 1, %s671_s14  ;;  %s33_s20 = sadd.s32 1, %s675_s15 }
   0xb   : > { %p31_p0 = scmp.ge.s32.totalorder %s30_s19, 2  ;;  %s42_s21 = sadd.s32 1, %s659_s11 }
   0xc   : > { %p49_p1 = scmp.ne.s32.totalorder %s659_s11, %s655_s10  ;;  %p50_p2 = scmp.eq.s32.totalorder %s679_s16, 0 }
   0xd   : > { %s881_s19 = smov (%p31_p0, %s30_s19), 0  ;;  %s883_s20 = smov (!%p31_p0, %s33_s20), %s675_s15 }
   0xe   : > { %s38_s22 = ssub.s32 %s671_s14, %s881_s19  ;;  %p750_p3 = por %p50_p2, %p49_p1 }
   0xf   : > { %p35_p4 = scmp.ge.s32.totalorder %s883_s20, 2  ;;  %p55_p5 = scmp.ne.s32.totalorder %s655_s10, %s651_s9 }
  0x10   : > { %p56_p6 = scmp.eq.s32.totalorder %s409_s17, 0  ;;  %p109_p7 = scmp.eq.s32.totalorder %s409_s17, 3 }
  0x11   : > { %s885_s20 = smov (%p35_p4, %s883_s20), 0  ;;  %p115_p10 = scmp.eq.s32.totalorder %s410_s18, 3 }
  0x12   : > { %p758_p8 = por %p56_p6, %p55_p5  ;;  %p762_p9 = por %p109_p7, %p49_p1 }
  0x13   : > { %s37_s26 = ssub.s32 %s675_s15, %s885_s20  ;;  %p768_p12 = por %p115_p10, %p55_p5 }
  0x14   : > { %s39_s27 = sor.u32 %s38_s22, %s37_s26  ;;  %p445_p13 = scmp.lt.s32.totalorder %s679_s16, 4 }
  0x15   : > { %p40_p11 = scmp.eq.s32.totalorder %s39_s27, 0  ;;  %s135_s29 = sand.u32 1, %s659_s11  }
  0x16   : > { %s413_s3 = sshll.u32 %s135_s29, 2  ;;  %s414_s4 = sshll.u32 %s675_s15, 1 }
  0x17   : > { %s775_s30 = scalar_select %p40_p11, %s659_s11, %s42_s21  }
  0x18   : > { %s143_s5 = sadd.s32 %s671_s14, %s414_s4  ;;  %s139_s6 = scalar_lea.vmem [#allocation2], %s413_s3 }
  0x19   : > { %s149_s7 = sshll.u32 %s139_s6, 4  ;;  %s415_s8 = sshll.u32 %s143_s5, 2  ;;  %s150_s7 = int_to_ptr.vmem [resolvable:$true] %s149_s7 }
  0x1a   : > { %s145_s22 = scalar_lea.hbm %s865_s0, %s415_s8  ;;  %p784_p0 = pnand %p445_p13, %p750_p3 }
  0x1b   : > { %s147_s21 = sshll.u32 %s145_s22, 4  ;;  %p417_p1 = scmp.ge.s32.totalorder %s679_s16, 1  ;;  %s148_s21 = int_to_ptr.hbm [resolvable:$true] %s147_s21 }
  0x1c   : > { %s136_s27 = scalar_lea.sflag [#allocation3], %s135_s29  ;;  %p173_p2 = scmp.lt.s32.totalorder %s679_s16, 5 }
  0x1d   : > { %437 = dma.hbm_to_vmem [thread:$0]  (!%p784_p0), %s148_s21, 64, %s150_s7, %s136_s27  }
  0x1e   : > { %s164_s6 = scalar_lea.hbm %s866_s1, %s143_s5  ;;  %p174_p4 = pnand %p417_p1, %p173_p2 }
  0x1f   : > { %s166_s8 = sshll.u32 %s164_s6, 4  ;;  %s159_s23 = scalar_lea.vmem [#allocation5], %s135_s29  ;;  %s167_s8 = int_to_ptr.hbm [resolvable:$true] %s166_s8 }
  0x20   : > { %s168_s17 = sshll.u32 %s159_s23, 4  ;;  %s157_s18 = scalar_lea.sflag [#allocation6], %s135_s29  ;;  %s169_s17 = int_to_ptr.vmem [resolvable:$true] %s168_s17 }
  0x21   : > { %440 = dma.hbm_to_vmem [thread:$0]  (!%p784_p0), %s167_s8, 16, %s169_s17, %s157_s18  }
  0x22   : > { %177 = sbr.rel (%p174_p4) target bundleno = 287 (0x11f), region = 28  ;;  %s798_s22 = sand.u32 (!%p174_p4), 1, %s655_s10  }
  0x23   : > { %s418_s7 = sshll.u32 (!%p174_p4), %s798_s22, 2  ;;  %s180_s21 = scalar_lea.sflag (!%p174_p4), [#allocation3], %s798_s22 }
  0x24   : > { %s183_s27 = scalar_lea.vmem (!%p174_p4), [#allocation2], %s418_s7 }
  0x27   : > { %638 = dma.done.wait (%p758_p8), %s180_s21, 64  }
  0x28   : > { %640 = vsyncadd (%p758_p8), %s180_s21, 4294967232  ;;  %s190_s29 = scalar_lea.sflag [#allocation6], %s798_s22  ;;  %s192_s5 = scalar_lea.vmem [#allocation5], %s798_s22 }
  0x29   : > { %642 = dma.done.wait (%p758_p8), %s190_s29, 16  }
  0x2a   : > { %644 = vsyncadd (%p758_p8), %s190_s29, 4294967280  ;;  %vm219_vm0 = vcmask 1043456   ;;  %v217_v0 = vld [vmem:[%s183_s27] sm:$0xf]  ;;  %v227_v6 = vlaneseq  ;;  %s419_s24 = sshll.u32 %s663_s12, 7  ;;  %vm262_vm5 = vcmask 1040384  }
  0x2b   : > { %v220_v1 = vsel %vm219_vm0, %v217_v0, -inf  ;;  %v512_v10 = vld [vmem:[%s192_s5] ss:$0 sm:$0xff]  ;;  %v255_v28 = vstv %s419_s24  ;;  %v681_v39 = vmov 0.0   ;;  %s421_s26 = sshll.u32 %s667_s13, 1  ;;  %s216_s23 = scalar_lea.vmem [#allocation7], %s798_s22 }
  0x2c   : > { %v221_v2 = vrot.slane %v220_v1, 4  ;;  %v228_v9 = vshrl.u32 %v227_v6, 7  ;;  %v254_v27 = vand.u32 127, %v227_v6  ;;  %v218_v31 = vld [vmem:[%s192_s5] sm:$0x1]  ;;  %s302_s3 = sadd.s32 %s663_s12, %s421_s26  ;;  %s305_s17 = sshll.u32 %s216_s23, 4  ;;  %s306_s17 = int_to_ptr.vmem [resolvable:$true] %s305_s17 }
  0x2d   : > { %vm257_vm2 = vcmp.ne.s32.totalorder %v218_v31, 255  ;;  %s303_s8 = scalar_lea.hbm %s867_s2, %s302_s3  ;;  %s293_s12 = scalar_lea.sflag [#allocation4], %s798_s22 }
  0x2e   : > { %v222_v3 = vmax.f32 %v220_v1, %v221_v2  ;;  %vm230_vm1 = vcmp.eq.s32.totalorder %v228_v9, %v512_v10  ;;  %v256_v30 = vadd.s32 %v255_v28, %v254_v27  ;;  %vm286_vm6 = vcmp.eq.s32.totalorder %v254_v27, 1  ;;  %s307_s7 = sshll.u32 %s303_s8, 4  ;;  %s597_s24 = scalar_lea.hbm %s867_s2, 4  ;;  %s308_s7 = int_to_ptr.hbm [resolvable:$true] %s307_s7 }
  0x2f   : > { %v231_v13 = vsel %vm230_vm1, %v217_v0, 0.0  ;;  %vm285_vm7 = vcmp.eq.s32.totalorder %v254_v27, 0  ;;  %s591_s13 = sshra.s32 %s308_s7, 4  ;;  %s592_s13 = int_to_ptr.hbm [resolvable:$true] %s591_s13 }
  0x30   : > { %v223_v4 = vrot.slane %v222_v3, 2  ;;  %v232_v14 = vsel %vm219_vm0, %v231_v13, 0.0  ;;  %vm258_vm3 = vcmp.lt.s32.totalorder %v256_v30, 256  ;;  %s593_s27 = scalar_lea.hbm %s592_s13, 1  ;;  %p598_p7 = scmp.lt.s32.totalorder %s592_s13, %s867_s2 }
  0x31   : > { %v233_v16 = vrot.slane %v232_v14, 4  ;;  %vm259_vm4 = vmand %vm257_vm2, %vm258_vm3  ;;  %p594_p3 = scmp.ne.s32.totalorder %s592_s13, %s593_s27  ;;  %p599_p8 = scmp.lt.s32.totalorder %s597_s24, %s593_s27 }
  0x32   : > { %v224_v5 = vmax.f32 %v222_v3, %v223_v4  ;;  %v420_v40 = vsel %vm259_vm4, 1.0, %v681_v39 }
  0x33   : > { %v234_v20 = vadd.f32 %v233_v16, %v232_v14  ;;  %v275_v41 = vsel %vm262_vm5, %v420_v40, 0.0  ;;  %p595_p5 = pnand %p594_p3, %p762_p9  ;;  %p600_p10 = por %p599_p8, %p598_p7 }
  0x34   : > { %v225_v7 = vrot.slane %v224_v5, 1 }
  0x35   : > { %v235_v23 = vrot.slane %v234_v20, 2  ;;  %p596_p6 = pneg %p595_p5 }
  0x36   : > { %v226_v8 = vmax.f32 %v224_v5, %v225_v7 }
  0x37   : > { %v236_v26 = vadd.f32 %v235_v23, %v234_v20  ;;  %p601_p11 = pnand %p600_p10, %p596_p6 }
  0x38   : > { %v239_v11 = vsub.f32 %v217_v0, %v226_v8 }
  0x39   : > { %v237_v29 = vrot.slane %v236_v26, 1 }
  0x3a   : > { %v240_v12 = vmul.f32 1.442695, %v239_v11 }
  0x3b   : > { %v238_v33 = vadd.f32 %v237_v29, %v236_v26 }
  0x3c   : > { %513 = vpow2.f32 %v240_v12 }
  0x42   : > { %v514_v15 = vpop.eup %513 }
  0x43   : > { %v242_v17 = vsel %vm219_vm0, %v514_v15, 0.0 }
  0x44   : > { %v243_v18 = vrot.slane %v242_v17, 4 }
  0x46   : > { %v244_v19 = vadd.f32 %v243_v18, %v242_v17 }
  0x48   : > { %v245_v21 = vrot.slane %v244_v19, 2 }
  0x4a   : > { %v246_v22 = vadd.f32 %v245_v21, %v244_v19 }
  0x4c   : > { %v247_v24 = vrot.slane %v246_v22, 1 }
  0x4e   : > { %v248_v25 = vadd.f32 %v247_v24, %v246_v22 }
  0x50   : > { %515 = vlog2.f32 %v248_v25 }
  0x56   : > { %v516_v32 = vpop.eup %515 }
  0x57   : > { %v250_v34 = vmul.f32 0.6931472, %v516_v32 }
  0x59   : > { %v251_v35 = vadd.f32 %v250_v34, %v226_v8 }
  0x5b   : > { %v260_v36 = vsub.f32 %v251_v35, %v238_v33 }
  0x5d   : > { %v261_v37 = vsel %vm259_vm4, %v260_v36, 0.0 }
  0x5e   : > { %v263_v38 = vsel %vm262_vm5, %v261_v37, 0.0 }
  0x5f   : > { %264 = vadd.xlane.f32.xlu0 %v263_v38 }
  0x67   : > { %276 = vadd.xlane.f32.xlu0 %v275_v41 }
  0xd2   : > { %v265_v42 = vpop.xlane.xlu0 %264 }
  0xd3   : > { %v266_v43 = vrot.slane %v265_v42, 4 }
  0xd5   : > { %v267_v44 = vadd.f32 %v266_v43, %v265_v42 }
  0xd7   : > { %v268_v45 = vrot.slane %v267_v44, 2 }
  0xd9   : > { %v269_v46 = vadd.f32 %v268_v45, %v267_v44 }
  0xda   : > { %v277_v47 = vpop.xlane.xlu0 %276 }
  0xdb   : > { %v278_v48 = vrot.slane %v277_v47, 4  ;;  %v270_v49 = vrot.slane %v269_v46, 1 }
  0xdd   : > { %v279_v50 = vadd.f32 %v278_v48, %v277_v47  ;;  %v271_v51 = vadd.f32 %v270_v49, %v269_v46 }
  0xdf   : > { %v280_v52 = vrot.slane %v279_v50, 2  ;;  %424 = vpush %v271_v51 }
  0xe1   : > { %v281_v53 = vadd.f32 %v280_v52, %v279_v50 }
  0xe3   : > { %v282_v54 = vrot.slane %v281_v53, 1 }
  0xe5   : > { %v283_v55 = vadd.f32 %v282_v54, %v281_v53 }
  0xe7   : > { %426 = vpush %v283_v55 }
 0x110   : > { %s425_s18 = spop %424 }
 0x111   : > { %v289_v57 = vstv %s425_s18 }
 0x118   : > { %s427_s21 = spop %426 }
 0x119   : > { %v287_v56 = vstv %s427_s21 }
 0x11a   : > { %v288_v58 = vsel %vm286_vm6, %v287_v56, 0.0 }
 0x11b   : > { %v290_v59 = vsel %vm285_vm7, %v289_v57, %v288_v58 }
 0x11c   : > { %291 = vst [vmem:[%s216_s23] sm:$0x1] %v290_v59 }
 0x11d   : > { %604 = shalt.err (!%p601_p11)
}
 0x11e   : > { %432 = dma.vmem_to_hbm [thread:$0]  (%p762_p9), %s306_s17, 16, %s308_s7, %s293_s12  }
 0x11f PF: > { %p446_p13 = scmp.ge.s32.totalorder %s679_s16, 2  ;;  %s319_s22 = sand.u32 1, %s651_s9  }
 0x120   : > { %s320_s4 = scalar_lea.sflag [#allocation4], %s319_s22 }
 0x121   : > { %p442_p0 = pnand %p446_p13, %p768_p12 }
 0x123   : > { %p443_p1 = pneg %p442_p0 }
 0x125   : > { %646 = dma.done.wait (%p443_p1), %s320_s4, 16  }
 0x126   : > { %648 = vsyncadd (%p443_p1), %s320_s4, 4294967280  ;;  %s21_s16 = sadd.s32 1, %s679_s16   ;;  %s873_s9 = smov %s655_s10 }
 0x127   : > { %p18_p2 = scmp.ge.s32.totalorder %s21_s16, 6   ;;  %s874_s10 = smov %s659_s11 }
 0x128   : > { %s875_s11 = smov %s775_s30  ;;  %s876_s12 = smov %s671_s14 }
 0x129   : > { %s877_s13 = smov %s675_s15  ;;  %s878_s14 = smov %s881_s19 }
 0x12a   : > { %s879_s15 = smov %s885_s20  ;;  %20 = sbr.rel (!%p18_p2) target bundleno = 9 (0x9), region = 86 }
 0x12f   :  { %325 = vsyncpa [#allocation3], 1 }
 0x130   :  { %327 = vsyncpa [#allocation3 + $0x1], 1 }
 0x131   :  { %328 = vsyncpa [#allocation6], 1 }
 0x132   :  { %330 = vsyncpa [#allocation6 + $0x1], 1 }
 0x133   :  { %331 = vsyncpa [#allocation4], 1 }
 0x134   :  { %333 = vsyncpa [#allocation4 + $0x1], 1 }

</bundles_post_ra>
